<compile_context>
chip_gen: v5e
topology: v5e:2x2
jax: 0.10.0
libtpu: 0.0.40
codegen_flags: <defaults>
</compile_context>

<pallas_src>
import math

import jax
import jax.numpy as jnp
from jax.experimental import pallas as pl
from jax.experimental.pallas import tpu as pltpu


def _round_up(x, m):
    return (x + m - 1) // m * m


def _pick_tile(extent, max_tile, align):
    """Largest tile <= max_tile (aligned) that avoids padding `extent` to a full tile."""
    ext = _round_up(extent, align)
    if ext <= max_tile:
        return ext
    n_tiles = math.ceil(ext / max_tile)
    return _round_up(math.ceil(ext / n_tiles), align)


# ----------------------------------------------------------------------------- kernels


def _dense_vec_kernel_f32out(x_ref, w_ref, b_ref, o_ref):
    """f32-output path: accumulate straight into o_ref (resident across the K axis)."""

    @pl.when(pl.program_id(2) == 0)
    def _init():
        # Initialize the accumulator with the broadcast bias: no finalize add needed.
        o_ref[...] = jnp.broadcast_to(b_ref[...], o_ref.shape)

    o_ref[...] += jnp.dot(x_ref[...], w_ref[...],
                          preferred_element_type=jnp.float32)


def _dense_vec_kernel_acc(x_ref, w_ref, b_ref, o_ref, acc_ref):
    """Narrow-output path: f32 VMEM accumulator, cast on the final K step."""

    @pl.when(pl.program_id(2) == 0)
    def _init():
        acc_ref[...] = jnp.broadcast_to(b_ref[...], acc_ref.shape)

    acc_ref[...] += jnp.dot(x_ref[...], w_ref[...],
                            preferred_element_type=jnp.float32)

    @pl.when(pl.program_id(2) == pl.num_programs(2) - 1)
    def _finalize():
        o_ref[...] = acc_ref[...].astype(o_ref.dtype)


# ----------------------------------------------------------------------------- wrapper


def prepare_dense_vec_params(weight, bias, *, compute_dtype=jnp.bfloat16,
                             tn_max=512, tk_max=1024):
    """One-time parameter relayout. Call OUTSIDE the hot path.

    weight: (N, K) as in torch.nn.Linear; bias: (N,).
    Returns (w_kn, b_row, n_out, tn, tk):
      w_kn : (Kp, Np) in compute_dtype -- padded + transposed once so the kernel
             runs a plain (tm,tk)x(tk,tn) MXU matmul (no per-step XLU transpose).
      b_row: (1, Np) float32           -- bias kept in f32 for exact accumulation.
    """
    N, K = weight.shape
    assert bias.shape == (N,)
    tn = _pick_tile(N, tn_max, 128)
    tk = _pick_tile(K, tk_max, 128)
    Np, Kp = _round_up(N, tn), _round_up(K, tk)

    w = weight.astype(compute_dtype)
    if (Np, Kp) != (N, K):
        w = jnp.pad(w, ((0, Np - N), (0, Kp - K)))
    w_kn = jnp.asarray(w.T)  # (Kp, Np): one-time relayout, not per call.

    b_row = bias.astype(jnp.float32)
    if Np != N:
        b_row = jnp.pad(b_row, (0, Np - N))
    b_row = b_row.reshape(1, Np)
    return w_kn, b_row, N, tn, tk


def dense_vec(x, w_kn, b_row, n_out, tn, tk, *, tm_max=512,
              out_dtype=None, vmem_limit_bytes=None):
    """DenseVec forward: (x @ W.T + b)[..., None] using prepared params.

    x: (B, K). w_kn: (Kp, Np) prepared weight. b_row: (1, Np) f32 bias.
    Returns (B, n_out, 1) in out_dtype (default x.dtype).
    """
    B, K = x.shape
    Kp, Np = w_kn.shape
    assert K <= Kp and n_out <= Np and b_row.shape == (1, Np)
    out_dtype = x.dtype if out_dtype is None else out_dtype
    compute_dtype = w_kn.dtype

    # Keep Mp//tm == 1 when the batch fits one tile (weight then streams from HBM
    # exactly once); otherwise shrink tm so M is not padded to a full tile.
    tm = _pick_tile(B, tm_max, 8)
    Mp = _round_up(B, tm)

    xp = x.astype(compute_dtype)
    if (Mp, Kp) != (B, K):
        xp = jnp.pad(xp, ((0, Mp - B), (0, Kp - K)))

    grid = (Mp // tm, Np // tn, Kp // tk)

    out_is_f32 = jnp.dtype(out_dtype) == jnp.dtype(jnp.float32)
    if out_is_f32:
        kernel = _dense_vec_kernel_f32out
        scratch = []
        acc_bytes = 0
    else:
        kernel = _dense_vec_kernel_acc
        scratch = [pltpu.VMEM((tm, tn), jnp.float32)]
        acc_bytes = tm * tn * 4

    cdt = jnp.dtype(compute_dtype).itemsize
    odt = jnp.dtype(out_dtype).itemsize

    # Per-step VMEM (double-buffered input/output tiles + accumulator + bias).
    vmem_bytes = (2 * (tm * tk + tk * tn) * cdt
                  + 2 * tm * tn * odt + 2 * tn * 4 + acc_bytes)
    if vmem_limit_bytes is None and vmem_bytes > (14 << 20):
        # Above the smallest (v5e) scoped default; stay under v7x's 64 MiB VMEM.
        vmem_limit_bytes = min(vmem_bytes + (8 << 20), 48 << 20)

    # HBM traffic including grid re-reads: x is re-read per N tile, weight per M tile,
    # bias per (M tile, N tile); output written back once per output tile.
    cost = pl.CostEstimate(
        flops=2 * Mp * Np * Kp,
        transcendentals=0,
        bytes_accessed=int(Mp * Kp * cdt * (Np // tn)
                           + Kp * Np * cdt * (Mp // tm)
                           + Np * 4 * (Mp // tm)
                           + Mp * Np * odt))

    out = pl.pallas_call(
        kernel,
        out_shape=jax.ShapeDtypeStruct((Mp, Np), out_dtype),
        grid_spec=pltpu.PrefetchScalarGridSpec(
            num_scalar_prefetch=0,
            grid=grid,
            in_specs=[
                pl.BlockSpec((tm, tk), lambda i, j, k: (i, k)),   # x tile
                pl.BlockSpec((tk, tn), lambda i, j, k: (k, j)),   # weight (K, N) tile
                pl.BlockSpec((1, tn), lambda i, j, k: (0, j)),    # bias row tile
            ],
            out_specs=pl.BlockSpec((tm, tn), lambda i, j, k: (i, j)),
            scratch_shapes=scratch,
        ),
        compiler_params=pltpu.CompilerParams(
            dimension_semantics=("parallel", "parallel", "arbitrary"),
            vmem_limit_bytes=vmem_limit_bytes),
        cost_estimate=cost,
    )(xp, w_kn, b_row)

    # Slice off padding; the [..., None] from the PyTorch forward is layout glue.
    return out[:B, :n_out][..., None]


# ----------------------------------------------------------------------------- demo


if __name__ == "__main__":
    # Small shapes consistent with the module: batch=8, input_dim=32, output_dim=64.
    B, input_dim, output_dim = 8, 32, 64

    key = jax.random.PRNGKey(0)
    kx, kw, kb = jax.random.split(key, 3)

    x = jax.random.normal(kx, (B, input_dim), dtype=jnp.float32)
    # Deterministic synthetic "Linear" parameters (not a checkpoint load).
    bound = 1.0 / (input_dim ** 0.5)
    weight = jax.random.uniform(kw, (output_dim, input_dim),
                                minval=-bound, maxval=bound, dtype=jnp.float32)
    bias = jax.random.uniform(kb, (output_dim,),
                              minval=-bound, maxval=bound, dtype=jnp.float32)

    # One-time parameter relayout (bf16 compute by default), outside the hot path.
    w_kn, b_row, n_out, tn, tk = prepare_dense_vec_params(weight, bias)

    y = dense_vec(x, w_kn, b_row, n_out, tn, tk)
    jax.block_until_ready(y)

    assert y.shape == (B, output_dim, 1), y.shape
    assert y.dtype == x.dtype

    # Tight check vs. a reference doing the same arithmetic (bf16 operands, f32 accumulate).
    xr = x.astype(jnp.bfloat16).astype(jnp.float32)
    wr = weight.astype(jnp.bfloat16).astype(jnp.float32)
    y_ref_bf16 = (xr @ wr.T + bias)[..., None]
    assert jnp.allclose(y, y_ref_bf16, atol=1e-4, rtol=1e-4)

    # Loose sanity vs. the full-f32 PyTorch semantics (bf16 operand rounding bound).
    y_ref_f32 = (x @ weight.T + bias)[..., None]
    assert jnp.allclose(y, y_ref_f32, atol=5e-2, rtol=5e-2)

    print("KERNEL_OK")
</pallas_src>

<mosaic_0001>
module attributes {stable_mosaic.version = 11 : i64} {
  func.func @_dense_vec_kernel_f32out(%arg0: i32, %arg1: i32, %arg2: i32, %arg3: memref<8x128xbf16, #tpu.memory_space<vmem>>, %arg4: memref<128x128xbf16, #tpu.memory_space<vmem>>, %arg5: memref<1x128xf32, #tpu.memory_space<vmem>>, %arg6: memref<8x128xf32, #tpu.memory_space<vmem>>) attributes {dimension_semantics = [#tpu.dimension_semantics<parallel>, #tpu.dimension_semantics<parallel>, #tpu.dimension_semantics<arbitrary>], iteration_bounds = array<i64: 1, 1, 1>, scalar_prefetch = 0 : i64, scratch_operands = 0 : i64, tpu.core_type = #tpu.core_type<tc>, window_params = [{transform_indices = @transform_0, window_bounds = array<i64: 8, 128>}, {transform_indices = @transform_1, window_bounds = array<i64: 128, 128>}, {transform_indices = @transform_2, window_bounds = array<i64: 1, 128>}, {transform_indices = @transform_3, window_bounds = array<i64: 8, 128>}]} {
    %c0_i32 = arith.constant 0 : i32
    %0 = arith.cmpi eq, %arg2, %c0_i32 : i32
    %1 = arith.extui %0 : i1 to i32
    %c0_i32_0 = arith.constant 0 : i32
    %2 = arith.cmpi ne, %1, %c0_i32_0 : i32
    scf.if %2 {
      %c0_8 = arith.constant 0 : index
      %c0_9 = arith.constant 0 : index
      %9 = vector.load %arg5[%c0_8, %c0_9] : memref<1x128xf32, #tpu.memory_space<vmem>>, vector<1x128xf32>
      %10 = vector.shape_cast %9 : vector<1x128xf32> to vector<1x128xf32>
      %11 = vector.broadcast %10 : vector<1x128xf32> to vector<8x128xf32>
      %c0_10 = arith.constant 0 : index
      %c0_11 = arith.constant 0 : index
      %12 = vector.load %arg6[%c0_10, %c0_11] : memref<8x128xf32, #tpu.memory_space<vmem>>, vector<8x128xf32>
      tpu.vector_store %arg6[%c0_10, %c0_11], %11 {strides = array<i32>} : memref<8x128xf32, #tpu.memory_space<vmem>>, vector<8x128xf32>,
    } else {
    }
    %c0 = arith.constant 0 : index
    %c0_1 = arith.constant 0 : index
    %3 = vector.load %arg6[%c0, %c0_1] : memref<8x128xf32, #tpu.memory_space<vmem>>, vector<8x128xf32>
    %c0_2 = arith.constant 0 : index
    %c0_3 = arith.constant 0 : index
    %4 = vector.load %arg3[%c0_2, %c0_3] : memref<8x128xbf16, #tpu.memory_space<vmem>>, vector<8x128xbf16>
    %c0_4 = arith.constant 0 : index
    %c0_5 = arith.constant 0 : index
    %5 = vector.load %arg4[%c0_4, %c0_5] : memref<128x128xbf16, #tpu.memory_space<vmem>>, vector<128x128xbf16>
    %cst = arith.constant dense<0.000000e+00> : vector<8x128xf32>
    %6 = tpu.matmul %4, %5, %cst {dimension_numbers = #tpu.dot_dimension_numbers<[1], [0], [0], [1], [0, 0, 1, 1], [], []>} : vector<8x128xbf16>, vector<128x128xbf16>, vector<8x128xf32> -> vector<8x128xf32>
    %7 = arith.addf %3, %6 : vector<8x128xf32>
    %c0_6 = arith.constant 0 : index
    %c0_7 = arith.constant 0 : index
    %8 = vector.load %arg6[%c0_6, %c0_7] : memref<8x128xf32, #tpu.memory_space<vmem>>, vector<8x128xf32>
    tpu.vector_store %arg6[%c0_6, %c0_7], %7 {strides = array<i32>} : memref<8x128xf32, #tpu.memory_space<vmem>>, vector<8x128xf32>,
    return
  }
  func.func @transform_0(%arg0: i32, %arg1: i32, %arg2: i32) -> (i32, i32) {
    %c0_i32 = arith.constant 0 : i32
    return %arg0, %arg2 : i32, i32
  }
  func.func @transform_1(%arg0: i32, %arg1: i32, %arg2: i32) -> (i32, i32) {
    %c0_i32 = arith.constant 0 : i32
    return %arg2, %arg1 : i32, i32
  }
  func.func @transform_2(%arg0: i32, %arg1: i32, %arg2: i32) -> (i32, i32) {
    %c0_i32 = arith.constant 0 : i32
    %c0_i32_0 = arith.constant 0 : i32
    return %c0_i32, %arg1 : i32, i32
  }
  func.func @transform_3(%arg0: i32, %arg1: i32, %arg2: i32) -> (i32, i32) {
    %c0_i32 = arith.constant 0 : i32
    return %arg0, %arg1 : i32, i32
  }
}

</mosaic_0001>

<bundles_post_ra>
// kernel: tpu_custom_call.1
= control target key start
LH: loop header
LB: loop body
LE: loop exit
PB: predicated region body
PF: predicated region fallthrough
CT: control target
= control target key end

     0   :  { %8 = vsyncpa [#allocation3], 0  ;;  %s314_s0 = inlined_call_operand.hbm [shape: bf16[8,128], index: 0, kind: input, shape index: {}]   ;;  %s315_s1 = inlined_call_operand.hbm [shape: bf16[128,128], index: 1, kind: input, shape index: {}]   ;;  %s316_s2 = inlined_call_operand.vmem [shape: f32[1,128], index: 2, kind: input, shape index: {}]   ;;  %s317_s3 = inlined_call_operand.hbm [shape: f32[8,128], index: 3, kind: output, shape index: {}]  }
   0x1   :  { %9 = vsyncpa [#allocation6], 0 }
   0x2   :  { %10 = vsyncpa [#allocation4], 0  ;;  %s16_s14 = sshll.u32 %s314_s0, 4  ;;  %s277_s15 = smov [#allocation2]   ;;  %s17_s14 = int_to_ptr.hbm [resolvable:$true] %s16_s14 }
   0x3   :  { %s18_s16 = sshll.u32 %s277_s15, 4  ;;  %s26_s19 = sshll.u32 %s315_s1, 4  ;;  %s19_s16 = int_to_ptr.vmem [resolvable:$true] %s18_s16  ;;  %s27_s19 = int_to_ptr.hbm [resolvable:$true] %s26_s19 }
   0x4   :  { %21 = dma.hbm_to_vmem [thread:$0]  %s17_s14, 64, %s19_s16, [#allocation3]  }
   0x5   :  { %s278_s20 = smov [#allocation5]   ;;  %s279_s22 = smov 64  }
   0x6   :  { %s28_s21 = sshll.u32 %s278_s20, 4  ;;  %s280_s23 = smov 4   ;;  %s29_s21 = int_to_ptr.vmem [resolvable:$true] %s28_s21 }
   0x7   :  { %34 = dma.hbm_to_vmem [thread:$0]  %s27_s19, 1024, %s29_s21, [#allocation6], %s279_s22, %s279_s22, %s280_s23  }
   0x8   :  { %271 = dma.done.wait [#allocation3], 64  }
   0x9   :  { %272 = vsyncadd [#allocation3], 4294967232 }
   0xa   :  { %273 = dma.done.wait [#allocation6], 1024  }
   0xb   :  { %274 = vsyncadd [#allocation6], 4294966272  ;;  %v192_v0 = vld [vmem:[#allocation5 + $0x38] sm:$0xff]  ;;  %v191_v1 = vld [vmem:[#allocation5 + $0x30] sm:$0xff]  ;;  %s281_s24 = smov [#allocation7]   ;;  %s142_s28 = sshll.u32 %s317_s3, 4  ;;  %s143_s28 = int_to_ptr.hbm [resolvable:$true] %s142_s28 }
   0xc   :  { %120 = vmatpush.bf16.msra.mxu0 %v192_v0  ;;  %v190_v2 = vld [vmem:[#allocation5 + $0x28] sm:$0xff]  ;;  %v189_v3 = vld [vmem:[#allocation5 + $0x20] sm:$0xff]  ;;  %v188_v4 = vld [vmem:[#allocation5 + $0x18] sm:$0xff]  ;;  %s140_s25 = sshll.u32 %s281_s24, 4  ;;  %s141_s25 = int_to_ptr.vmem [resolvable:$true] %s140_s25 }
   0xd   :  { %v187_v5 = vld [vmem:[#allocation5 + $0x10] sm:$0xff]  ;;  %v186_v6 = vld [vmem:[#allocation5 + $0x8] sm:$0xff]  ;;  %v185_v7 = vld [vmem:[#allocation5] sm:$0xff] }
   0xe   :  { %v55_v8 = vld [vmem:[#allocation2] sm:$0xf] }
   0xf   :  { %v198_v9 = vld [vmem:[%s316_s2] ss:$0 sm:$0xff] }
  0x10   :  { %121 = vmatpush.bf16.msra.mxu0 %v191_v1 }
  0x14   :  { %122 = vmatpush.bf16.msra.mxu0 %v190_v2 }
  0x18   :  { %123 = vmatpush.bf16.msra.mxu0 %v189_v3 }
  0x1c   :  { %124 = vmatpush.bf16.msra.mxu0 %v188_v4 }
  0x20   :  { %125 = vmatpush.bf16.msra.mxu0 %v187_v5 }
  0x24   :  { %126 = vmatpush.bf16.msra.mxu0 %v186_v6 }
  0x28   :  { %127 = vmatpush.bf16.msra.mxu0 %v185_v7 }
  0x2b   :  { %128 = vmatmul.bf16.vlgmr.msra.gmra.mxu0 %v55_v8 }
  0xa8   :  { %v129_v10 = vpop.f32.mrf.mxu0 }
  0xa9   :  { %v133_v11 = vadd.f32 %v198_v9, %v129_v10 }
  0xab   :  { %134 = vst [vmem:[#allocation7] sm:$0xff] %v133_v11 }
  0xac   :  { %145 = dma.vmem_to_hbm [thread:$0]  %s141_s25, 128, %s143_s28, [#allocation4]  }
  0xb0   :  { %v131_v12 = vpop.f32.mrf.mxu0 }
  0xb1   :  { %275 = dma.done.wait [#allocation4], 128  }
  0xb2   :  { %276 = vsyncadd [#allocation4], 4294967168 }
  0xb3   :  { %150 = vsyncpa [#allocation3], 1 }
  0xb4   :  { %151 = vsyncpa [#allocation6], 1 }
  0xb5   :  { %152 = vsyncpa [#allocation4], 1 }

</bundles_post_ra>
